<compile_context>
chip_gen: v6e
topology: v6e:2x2x1
jax: 0.10.0
libtpu: 0.0.40
codegen_flags: <defaults>
</compile_context>

<pallas_src>
import functools
import math

import jax
import jax.numpy as jnp
from jax import lax
from jax.experimental import pallas as pl
from jax.experimental.pallas import tpu as pltpu


def _round_up(x: int, m: int) -> int:
    return ((x + m - 1) // m) * m


def _approx_gelu_kernel(x_ref, w_ref, b_ref, o_ref, acc_ref):
    # x_ref: (tm, tk)   w_ref: (tn, tk)  (PyTorch layout, contract last dims)
    # b_ref: (1, tn)    o_ref: (tm, tn)  acc_ref: (tm, tn) f32 scratch
    k = pl.program_id(2)

    @pl.when(k == 0)
    def _():
        acc_ref[...] = jnp.zeros_like(acc_ref)

    acc_ref[...] += lax.dot_general(
        x_ref[...],
        w_ref[...],
        dimension_numbers=(((1,), (1,)), ((), ())),
        preferred_element_type=jnp.float32,
    )

    @pl.when(k == pl.num_programs(2) - 1)
    def _():
        y = acc_ref[...] + b_ref[...].astype(jnp.float32)
        # approximate GELU: y * sigmoid(1.702 * y)  (exp + recip -> EUP)
        out = y * jax.nn.sigmoid(1.702 * y)
        o_ref[...] = out.astype(o_ref.dtype)


@jax.jit
def approximate_gelu(x, weight, bias=None):
    """ApproximateGELU forward.

    x: [..., dim_in]; weight: [dim_out, dim_in] (PyTorch nn.Linear layout);
    bias: [dim_out] or None.
    """
    dim_out, dim_in = weight.shape
    lead = x.shape[:-1]
    M = int(math.prod(lead)) if lead else 1
    x2 = x.reshape(M, dim_in)

    if bias is None:
        bias = jnp.zeros((dim_out,), weight.dtype)
    b2 = bias.reshape(1, dim_out)

    # ---- tile selection (sublane/lane aligned; pad where needed) ----
    Kp = _round_up(dim_in, 128)
    Np = _round_up(dim_out, 128)
    tm = min(512, _round_up(M, 8))
    Mp = _round_up(M, tm)
    tk = 512 if Kp % 512 == 0 else (256 if Kp % 256 == 0 else 128)
    tk = min(tk, Kp)
    tn = 256 if Np % 256 == 0 else 128
    tn = min(tn, Np)

    # ---- zero padding (exact: zero K-columns contribute nothing; padded
    #      rows / output columns are sliced off afterwards) ----
    if Mp != M or Kp != dim_in:
        x2 = jnp.pad(x2, ((0, Mp - M), (0, Kp - dim_in)))
    w = weight
    if Np != dim_out or Kp != dim_in:
        w = jnp.pad(w, ((0, Np - dim_out), (0, Kp - dim_in)))
    if Np != dim_out:
        b2 = jnp.pad(b2, ((0, 0), (0, Np - dim_out)))

    grid = (Np // tn, Mp // tm, Kp // tk)  # (j: N, i: M, k: K innermost)

    itemsize = jnp.dtype(x.dtype).itemsize
    cost = pl.CostEstimate(
        flops=2 * Mp * Kp * Np,
        transcendentals=Mp * Np,
        bytes_accessed=(Mp * Kp + Np * Kp + Mp * Np) * itemsize,
    )

    out2 = pl.pallas_call(
        _approx_gelu_kernel,
        out_shape=jax.ShapeDtypeStruct((Mp, Np), x.dtype),
        grid_spec=pltpu.PrefetchScalarGridSpec(
            num_scalar_prefetch=0,
            grid=grid,
            in_specs=[
                pl.BlockSpec((tm, tk), lambda j, i, k: (i, k)),   # x
                pl.BlockSpec((tn, tk), lambda j, i, k: (j, k)),   # weight (N,K)
                pl.BlockSpec((1, tn), lambda j, i, k: (0, j)),    # bias
            ],
            out_specs=pl.BlockSpec((tm, tn), lambda j, i, k: (i, j)),
            scratch_shapes=[pltpu.VMEM((tm, tn), jnp.float32)],
        ),
        compiler_params=pltpu.CompilerParams(
            dimension_semantics=("parallel", "parallel", "arbitrary"),
            vmem_limit_bytes=32 * 1024 * 1024,
        ),
        cost_estimate=cost,
    )(x2, w, b2)

    out2 = out2[:M, :dim_out]
    return out2.reshape(*lead, dim_out)


def _reference(x, weight, bias):
    y = jnp.einsum("...i,oi->...o", x, weight,
                   precision=jax.lax.Precision.HIGHEST) + bias
    return y * jax.nn.sigmoid(1.702 * y)


if __name__ == "__main__":
    key = jax.random.PRNGKey(0)
    k_x, k_w, k_b, k_x2, k_w2, k_b2 = jax.random.split(key, 6)

    # --- test 1: small aligned-ish shapes, f32, tight tolerance ---
    batch, seq, dim_in, dim_out = 2, 8, 32, 32
    bound = 1.0 / (dim_in ** 0.5)
    weight = jax.random.uniform(k_w, (dim_out, dim_in), jnp.float32, -bound, bound)
    bias = jax.random.uniform(k_b, (dim_out,), jnp.float32, -bound, bound)
    x = jax.random.normal(k_x, (batch, seq, dim_in), jnp.float32)

    out = approximate_gelu(x, weight, bias)
    jax.block_until_ready(out)
    ref = _reference(x, weight, bias)
    assert out.shape == (batch, seq, dim_out)
    assert jnp.allclose(out, ref, atol=1e-5, rtol=1e-5)

    # --- test 2: unaligned dims exercise the padding paths, f32 ---
    b2_, s2_, din2, dout2 = 3, 7, 40, 48
    bound2 = 1.0 / (din2 ** 0.5)
    weight2 = jax.random.uniform(k_w2, (dout2, din2), jnp.float32, -bound2, bound2)
    bias2 = jax.random.uniform(k_b2, (dout2,), jnp.float32, -bound2, bound2)
    x2 = jax.random.normal(k_x2, (b2_, s2_, din2), jnp.float32)

    out2 = approximate_gelu(x2, weight2, bias2)
    jax.block_until_ready(out2)
    ref2 = _reference(x2, weight2, bias2)
    assert out2.shape == (b2_, s2_, dout2)
    assert jnp.allclose(out2, ref2, atol=1e-5, rtol=1e-5)

    # --- test 3: bf16 operands (f32 accumulate), loose tolerance ---
    out_bf16 = approximate_gelu(
        x.astype(jnp.bfloat16), weight.astype(jnp.bfloat16), bias.astype(jnp.bfloat16)
    )
    jax.block_until_ready(out_bf16)
    assert out_bf16.dtype == jnp.bfloat16
    assert jnp.allclose(out_bf16.astype(jnp.float32), ref, atol=5e-2, rtol=5e-2)

    print("KERNEL_OK")
</pallas_src>

<mosaic_0001>
module attributes {stable_mosaic.version = 11 : i64} {
  func.func @_approx_gelu_kernel(%arg0: i32, %arg1: i32, %arg2: i32, %arg3: memref<16x128xf32, #tpu.memory_space<vmem>>, %arg4: memref<128x128xf32, #tpu.memory_space<vmem>>, %arg5: memref<1x128xf32, #tpu.memory_space<vmem>>, %arg6: memref<16x128xf32, #tpu.memory_space<vmem>>, %arg7: memref<16x128xf32, #tpu.memory_space<vmem>>) attributes {dimension_semantics = [#tpu.dimension_semantics<parallel>, #tpu.dimension_semantics<parallel>, #tpu.dimension_semantics<arbitrary>], iteration_bounds = array<i64: 1, 1, 1>, scalar_prefetch = 0 : i64, scratch_operands = 1 : i64, tpu.core_type = #tpu.core_type<tc>, window_params = [{transform_indices = @transform_0, window_bounds = array<i64: 16, 128>}, {transform_indices = @transform_1, window_bounds = array<i64: 128, 128>}, {transform_indices = @transform_2, window_bounds = array<i64: 1, 128>}, {transform_indices = @transform_3, window_bounds = array<i64: 16, 128>}]} {
    %c0_i32 = arith.constant 0 : i32
    %0 = arith.cmpi eq, %arg2, %c0_i32 : i32
    %1 = arith.extui %0 : i1 to i32
    %c0_i32_0 = arith.constant 0 : i32
    %2 = arith.cmpi ne, %1, %c0_i32_0 : i32
    scf.if %2 {
      %cst_10 = arith.constant 0.000000e+00 : f32
      %12 = vector.broadcast %cst_10 : f32 to vector<16x128xf32>
      %c0_11 = arith.constant 0 : index
      %c0_12 = arith.constant 0 : index
      %13 = vector.load %arg7[%c0_11, %c0_12] : memref<16x128xf32, #tpu.memory_space<vmem>>, vector<16x128xf32>
      tpu.vector_store %arg7[%c0_11, %c0_12], %12 {strides = array<i32>} : memref<16x128xf32, #tpu.memory_space<vmem>>, vector<16x128xf32>,
    } else {
    }
    %c0 = arith.constant 0 : index
    %c0_1 = arith.constant 0 : index
    %3 = vector.load %arg7[%c0, %c0_1] : memref<16x128xf32, #tpu.memory_space<vmem>>, vector<16x128xf32>
    %c0_2 = arith.constant 0 : index
    %c0_3 = arith.constant 0 : index
    %4 = vector.load %arg3[%c0_2, %c0_3] : memref<16x128xf32, #tpu.memory_space<vmem>>, vector<16x128xf32>
    %c0_4 = arith.constant 0 : index
    %c0_5 = arith.constant 0 : index
    %5 = vector.load %arg4[%c0_4, %c0_5] : memref<128x128xf32, #tpu.memory_space<vmem>>, vector<128x128xf32>
    %cst = arith.constant dense<0.000000e+00> : vector<16x128xf32>
    %6 = tpu.matmul %4, %5, %cst {dimension_numbers = #tpu.dot_dimension_numbers<[1], [1], [0], [0], [0, 0, 1, 0], [], []>} : vector<16x128xf32>, vector<128x128xf32>, vector<16x128xf32> -> vector<16x128xf32>
    %7 = arith.addf %3, %6 : vector<16x128xf32>
    %c0_6 = arith.constant 0 : index
    %c0_7 = arith.constant 0 : index
    %8 = vector.load %arg7[%c0_6, %c0_7] : memref<16x128xf32, #tpu.memory_space<vmem>>, vector<16x128xf32>
    tpu.vector_store %arg7[%c0_6, %c0_7], %7 {strides = array<i32>} : memref<16x128xf32, #tpu.memory_space<vmem>>, vector<16x128xf32>,
    %c0_i32_8 = arith.constant 0 : i32
    %9 = arith.cmpi eq, %arg2, %c0_i32_8 : i32
    %10 = arith.extui %9 : i1 to i32
    %c0_i32_9 = arith.constant 0 : i32
    %11 = arith.cmpi ne, %10, %c0_i32_9 : i32
    scf.if %11 {
      %c0_10 = arith.constant 0 : index
      %c0_11 = arith.constant 0 : index
      %12 = vector.load %arg7[%c0_10, %c0_11] : memref<16x128xf32, #tpu.memory_space<vmem>>, vector<16x128xf32>
      %c0_12 = arith.constant 0 : index
      %c0_13 = arith.constant 0 : index
      %13 = vector.load %arg5[%c0_12, %c0_13] : memref<1x128xf32, #tpu.memory_space<vmem>>, vector<1x128xf32>
      %14 = vector.broadcast %13 : vector<1x128xf32> to vector<16x128xf32>
      %15 = arith.addf %12, %14 : vector<16x128xf32>
      %cst_14 = arith.constant 1.702000e+00 : f32
      %16 = vector.broadcast %cst_14 : f32 to vector<16x128xf32>
      %17 = arith.mulf %16, %15 : vector<16x128xf32>
      %18 = arith.negf %17 : vector<16x128xf32>
      %19 = math.exp %18 : vector<16x128xf32>
      %cst_15 = arith.constant 1.000000e+00 : f32
      %20 = vector.broadcast %cst_15 : f32 to vector<16x128xf32>
      %21 = arith.addf %20, %19 : vector<16x128xf32>
      %22 = arith.divf %20, %21 : vector<16x128xf32>
      %23 = arith.mulf %15, %22 : vector<16x128xf32>
      %c0_16 = arith.constant 0 : index
      %c0_17 = arith.constant 0 : index
      %24 = vector.load %arg6[%c0_16, %c0_17] : memref<16x128xf32, #tpu.memory_space<vmem>>, vector<16x128xf32>
      tpu.vector_store %arg6[%c0_16, %c0_17], %23 {strides = array<i32>} : memref<16x128xf32, #tpu.memory_space<vmem>>, vector<16x128xf32>,
    } else {
    }
    return
  }
  func.func @transform_0(%arg0: i32, %arg1: i32, %arg2: i32) -> (i32, i32) {
    %c0_i32 = arith.constant 0 : i32
    return %arg1, %arg2 : i32, i32
  }
  func.func @transform_1(%arg0: i32, %arg1: i32, %arg2: i32) -> (i32, i32) {
    %c0_i32 = arith.constant 0 : i32
    return %arg0, %arg2 : i32, i32
  }
  func.func @transform_2(%arg0: i32, %arg1: i32, %arg2: i32) -> (i32, i32) {
    %c0_i32 = arith.constant 0 : i32
    %c0_i32_0 = arith.constant 0 : i32
    return %c0_i32, %arg0 : i32, i32
  }
  func.func @transform_3(%arg0: i32, %arg1: i32, %arg2: i32) -> (i32, i32) {
    %c0_i32 = arith.constant 0 : i32
    return %arg1, %arg0 : i32, i32
  }
}

</mosaic_0001>

<bundles_post_ra>
// kernel: approximate_gelu.1
= control target key start
LH: loop header
LB: loop body
LE: loop exit
PB: predicated region body
PF: predicated region fallthrough
CT: control target
= control target key end

     0   :  { %s302_s1 = inlined_call_operand.vmem [shape: f32[128,128], index: 1, kind: input, shape index: {}]   ;;  %s303_s0 = inlined_call_operand.vmem [shape: f32[16,128], index: 0, kind: input, shape index: {}]   ;;  %s304_s2 = inlined_call_operand.vmem [shape: f32[1,128], index: 2, kind: input, shape index: {}]   ;;  %s305_s3 = inlined_call_operand.vmem [shape: f32[16,128], index: 3, kind: output, shape index: {}]  }
   0x1   :  { %v39_v0 = vld [vmem:[%s302_s1 + $0x78] sm:$0xff]  ;;  %v38_v1 = vld [vmem:[%s302_s1 + $0x70] sm:$0xff]  ;;  %v37_v2 = vld [vmem:[%s302_s1 + $0x68] sm:$0xff] }
   0x2   :  { %176 = vmatprep.subr.mxu0 %v39_v0  ;;  %v22_v3 = vld [vmem:[%s303_s0] sm:$0xff]  ;;  %v35_v5 = vld [vmem:[%s302_s1 + $0x58] sm:$0xff]  ;;  %v34_v6 = vld [vmem:[%s302_s1 + $0x50] sm:$0xff] }
   0x3   :  { %177 = vmatpush3.xpose.msra.mxu0 %v39_v0  ;;  %208 = vmatprep.mubr.f32.mxu0 %v22_v3  ;;  %v36_v4 = vld [vmem:[%s302_s1 + $0x60] sm:$0xff]  ;;  %v33_v7 = vld [vmem:[%s302_s1 + $0x48] sm:$0xff]  ;;  %v31_v9 = vld [vmem:[%s302_s1 + $0x38] sm:$0xff] }
   0x4   :  { %178 = vmatprep.subr.mxu0 %v38_v1  ;;  %v32_v8 = vld [vmem:[%s302_s1 + $0x40] sm:$0xff]  ;;  %v30_v10 = vld [vmem:[%s302_s1 + $0x30] sm:$0xff]  ;;  %v29_v11 = vld [vmem:[%s302_s1 + $0x28] sm:$0xff] }
   0x5   :  { %v28_v12 = vld [vmem:[%s302_s1 + $0x20] sm:$0xff]  ;;  %v27_v13 = vld [vmem:[%s302_s1 + $0x18] sm:$0xff]  ;;  %v26_v14 = vld [vmem:[%s302_s1 + $0x10] sm:$0xff] }
   0x6   :  { %v25_v15 = vld [vmem:[%s302_s1 + $0x8] sm:$0xff]  ;;  %v24_v16 = vld [vmem:[%s302_s1] sm:$0xff] }
   0x7   :  { %179 = vmatpush3.xpose.msra.mxu0 %v38_v1  ;;  %v23_v17 = vld [vmem:[%s303_s0 + $0x8] sm:$0xff]  ;;  %v155_v18 = vld [vmem:[%s304_s2] ss:$0 sm:$0xff] }
   0x8   :  { %180 = vmatprep.subr.mxu0 %v37_v2 }
   0xb   :  { %181 = vmatpush3.xpose.msra.mxu0 %v37_v2 }
   0xc   :  { %182 = vmatprep.subr.mxu0 %v36_v4 }
   0xf   :  { %183 = vmatpush3.xpose.msra.mxu0 %v36_v4 }
  0x10   :  { %184 = vmatprep.subr.mxu0 %v35_v5 }
  0x13   :  { %185 = vmatpush3.xpose.msra.mxu0 %v35_v5 }
  0x14   :  { %186 = vmatprep.subr.mxu0 %v34_v6 }
  0x17   :  { %187 = vmatpush3.xpose.msra.mxu0 %v34_v6 }
  0x18   :  { %188 = vmatprep.subr.mxu0 %v33_v7 }
  0x1b   :  { %189 = vmatpush3.xpose.msra.mxu0 %v33_v7 }
  0x1c   :  { %190 = vmatprep.subr.mxu0 %v32_v8 }
  0x1f   :  { %191 = vmatpush3.xpose.msra.mxu0 %v32_v8 }
  0x20   :  { %192 = vmatprep.subr.mxu0 %v31_v9 }
  0x23   :  { %193 = vmatpush3.xpose.msra.mxu0 %v31_v9 }
  0x24   :  { %194 = vmatprep.subr.mxu0 %v30_v10 }
  0x27   :  { %195 = vmatpush3.xpose.msra.mxu0 %v30_v10 }
  0x28   :  { %196 = vmatprep.subr.mxu0 %v29_v11 }
  0x2b   :  { %197 = vmatpush3.xpose.msra.mxu0 %v29_v11 }
  0x2c   :  { %198 = vmatprep.subr.mxu0 %v28_v12 }
  0x2f   :  { %199 = vmatpush3.xpose.msra.mxu0 %v28_v12 }
  0x30   :  { %200 = vmatprep.subr.mxu0 %v27_v13 }
  0x33   :  { %201 = vmatpush3.xpose.msra.mxu0 %v27_v13 }
  0x34   :  { %202 = vmatprep.subr.mxu0 %v26_v14 }
  0x37   :  { %203 = vmatpush3.xpose.msra.mxu0 %v26_v14 }
  0x38   :  { %204 = vmatprep.subr.mxu0 %v25_v15 }
  0x3b   :  { %205 = vmatpush3.xpose.msra.mxu0 %v25_v15 }
  0x3c   :  { %206 = vmatprep.subr.mxu0 %v24_v16 }
  0x3f   :  { %207 = vmatpush3.xpose.msra.mxu0 %v24_v16 }
  0x42   :  { %209 = vmatmul.mubr.f32.vlgmr.msra.gmra.mxu0 %v23_v17 }
 0x102   :  { %v210_v19 = vpop.f32.mrf.mxu0 }
 0x103   :  { %v132_v20 = vadd.f32 %v210_v19, %v155_v18 }
 0x104   :  { %v106_v21 = vpop.f32.mrf.mxu0 }
 0x105   :  { %v157_v22 = vmul.f32 -1.702, %v132_v20  ;;  %v131_v23 = vadd.f32 %v155_v18, %v106_v21 }
 0x107   :  { %v139_v24 = vmul.f32 1.442695, %v157_v22  ;;  %v156_v25 = vmul.f32 -1.702, %v131_v23 }
 0x109   :  { %211 = vpow2.f32 %v139_v24  ;;  %v137_v26 = vmul.f32 1.442695, %v156_v25 }
 0x10b   :  { %213 = vpow2.f32 %v137_v26 }
 0x116   :  { %v212_v27 = vpop.eup %211 }
 0x117   :  { %v142_v28 = vadd.f32 1.0, %v212_v27 }
 0x118   :  { %v214_v29 = vpop.eup %213 }
 0x119   :  { %215 = vrcp.f32 %v142_v28  ;;  %v141_v30 = vadd.f32 1.0, %v214_v29 }
 0x11b   :  { %217 = vrcp.f32 %v141_v30 }
 0x126   :  { %v216_v31 = vpop.eup %215 }
 0x127   :  { %v148_v32 = vmul.f32 %v216_v31, %v132_v20 }
 0x128   :  { %v218_v33 = vpop.eup %217 }
 0x129   :  { %150 = vst [vmem:[%s305_s3 + $0x8] sm:$0xff] %v148_v32  ;;  %v147_v34 = vmul.f32 %v218_v33, %v131_v23 }
 0x12b   :  { %149 = vst [vmem:[%s305_s3] sm:$0xff] %v147_v34 }

</bundles_post_ra>
